<compile_context>
chip_gen: v6e
topology: v6e:2x2x1
jax: 0.10.0
libtpu: 0.0.40
codegen_flags: <defaults>
</compile_context>

<pallas_src>
import functools

import jax
import jax.numpy as jnp
from jax.experimental import pallas as pl
from jax.experimental.pallas import tpu as pltpu


def _device_kind():
    try:
        return jax.devices()[0].device_kind.lower()
    except Exception:
        return ""


_KIND = _device_kind()
# <= v5 chips have no bf16 VPU/EUP and a 128-wide MXU: keep GELU in f32 and use
# smaller tiles (v5e is already compute-bound at tm=256; tk=256 relieves the
# single vector-store slot).
_OLD_TPU = any(g in _KIND for g in ("v2", "v3", "v4", "v5"))
_DEFAULT_TM = 256 if _OLD_TPU else 512
_DEFAULT_TK = 256 if _OLD_TPU else 512
_ACT_DTYPE = jnp.float32 if _OLD_TPU else jnp.bfloat16

# Budget for keeping both weight matrices VMEM-resident (conservative for the
# v7x 64 MiB-per-TC VMEM; trivially fine on v5e/v6e's 128 MiB).
_RESIDENT_BUDGET = 36 * 1024 * 1024


def _gelu_tanh(x):
    # PyTorch nn.GELU(approximate='tanh'):
    # 0.5 * x * (1 + tanh(sqrt(2/pi) * (x + 0.044715 * x^3)))
    c = 0.7978845608028654  # sqrt(2/pi)
    return 0.5 * x * (1.0 + jnp.tanh(c * (x + 0.044715 * x * x * x)))


def mlp_kernel_resident(x_ref, wfc_ref, bfc_ref, wproj_ref, bproj_ref, o_ref,
                        *, act_dtype):
    # Grid: (M // tm,).  Whole c_fc / c_proj weights are VMEM-resident
    # (constant index_map => fetched once, reused for every row tile), so there
    # is no reduction axis and no accumulator.
    #
    # x_ref:     (tm, C) bf16    wfc_ref: (C, H) bf16    bfc_ref:   (1, H) f32
    # wproj_ref: (H, C)  bf16    bproj_ref: (1, C) f32   o_ref:     (tm, C)
    h = jnp.dot(x_ref[...], wfc_ref[...], preferred_element_type=jnp.float32)
    h = (h + bfc_ref[...]).astype(act_dtype)      # bf16 on v6e/v7x
    g = _gelu_tanh(h)
    out = jnp.dot(g.astype(jnp.bfloat16), wproj_ref[...],
                  preferred_element_type=jnp.float32)
    o_ref[...] = (out + bproj_ref[...]).astype(o_ref.dtype)


def mlp_kernel_stream(x_ref, wfc_ref, bfc_ref, wproj_ref, bproj_ref, o_ref,
                      acc_ref, *, act_dtype):
    # Grid: (M // tm, H // tk); axis 1 is the hidden-dim reduction.  Weight
    # chunks stream (double-buffered); acc_ref is a (tm, C) f32 accumulator.
    k = pl.program_id(1)

    @pl.when(k == 0)
    def _():
        acc_ref[...] = jnp.zeros_like(acc_ref)

    h = jnp.dot(x_ref[...], wfc_ref[...], preferred_element_type=jnp.float32)
    h = (h + bfc_ref[...]).astype(act_dtype)
    g = _gelu_tanh(h)
    acc_ref[...] += jnp.dot(g.astype(jnp.bfloat16), wproj_ref[...],
                            preferred_element_type=jnp.float32)

    @pl.when(k == pl.num_programs(1) - 1)
    def _():
        o_ref[...] = (acc_ref[...] + bproj_ref[...]).astype(o_ref.dtype)


def _round_up(n, m):
    return ((n + m - 1) // m) * m


def _pick_tk(H, tk_req):
    """Largest multiple of 128 that divides H and is <= tk_req (fallback: H)."""
    tk = max(128, (min(tk_req, H) // 128) * 128)
    for cand in range(tk, 127, -128):
        if H % cand == 0:
            return cand
    return H


def _footprint_bytes(resident, tm, tk, C, H, out_itemsize):
    x_b = 2 * tm * C * 2                      # double-buffered bf16 rows
    out_b = 2 * tm * C * out_itemsize         # double-buffered output tile
    b_proj_b = C * 4
    if resident:
        w_b = 2 * C * H * 2 + H * 4           # full bf16 weights + f32 bias
        inter = tm * H * (4 + 2)              # f32 matmul out + bf16 h/g
        acc = 0
    else:
        w_b = 2 * (C * tk * 2 + tk * C * 2 + tk * 4)   # double-buffered chunks
        inter = tm * tk * (4 + 2)
        acc = tm * C * 4
    return x_b + out_b + b_proj_b + w_b + inter + acc


@functools.partial(jax.jit, static_argnames=("tm", "tk"))
def mlp_forward(x, w_fc, b_fc, w_proj, b_proj, *, tm=_DEFAULT_TM, tk=_DEFAULT_TK):
    """x: [B, T, C].  w_fc: [C, 4C] (pref. bf16), b_fc: [4C],
    w_proj: [4C, C] (pref. bf16), b_proj: [C]."""
    B, T, C = x.shape
    H = w_fc.shape[1]               # 4 * C
    M = B * T

    # Row tile: as large as possible, multiple of 16 (bf16 sublane tile).
    # If everything fits a single tile but M is reasonably large, split in two
    # so both v7x TensorCores get a grid step on the parallel axis.
    Mp16 = _round_up(M, 16)
    tm = min(tm, Mp16)
    if Mp16 <= tm and Mp16 >= 256:
        tm = _round_up((Mp16 + 1) // 2, 16)
    Mp = _round_up(M, tm)

    out_itemsize = jnp.dtype(x.dtype).itemsize
    resident = _footprint_bytes(True, tm, 0, C, H, out_itemsize) <= _RESIDENT_BUDGET
    tk = H if resident else _pick_tk(H, tk)

    # Flatten + cast + pad in one fused XLA pass.
    x2 = x.reshape(M, C).astype(jnp.bfloat16)
    if Mp != M:
        x2 = jnp.pad(x2, ((0, Mp - M), (0, 0)))

    # Weights should already be bf16 (cast once, outside the hot path); the
    # astype below is a fallback and is a no-op when they are.
    w_fc_b = w_fc if w_fc.dtype == jnp.bfloat16 else w_fc.astype(jnp.bfloat16)
    w_proj_b = w_proj if w_proj.dtype == jnp.bfloat16 else w_proj.astype(jnp.bfloat16)
    b_fc2 = b_fc.reshape(1, H).astype(jnp.float32)
    b_proj2 = b_proj.reshape(1, C).astype(jnp.float32)

    fp = _footprint_bytes(resident, tm, tk, C, H, out_itemsize)
    vmem_limit = int(min(max(fp * 5 // 4 + (2 << 20), 24 << 20), 60 << 20))

    if resident:
        grid = (Mp // tm,)
        kernel = functools.partial(mlp_kernel_resident, act_dtype=_ACT_DTYPE)
        in_specs = [
            pl.BlockSpec((tm, C), lambda i: (i, 0)),   # x rows
            pl.BlockSpec((C, H), lambda i: (0, 0)),    # c_fc weight (resident)
            pl.BlockSpec((1, H), lambda i: (0, 0)),    # c_fc bias
            pl.BlockSpec((H, C), lambda i: (0, 0)),    # c_proj weight (resident)
            pl.BlockSpec((1, C), lambda i: (0, 0)),    # c_proj bias
        ]
        out_specs = pl.BlockSpec((tm, C), lambda i: (i, 0))
        scratch_shapes = []
        dims = ("parallel",)
    else:
        grid = (Mp // tm, H // tk)
        kernel = functools.partial(mlp_kernel_stream, act_dtype=_ACT_DTYPE)
        in_specs = [
            pl.BlockSpec((tm, C), lambda i, k: (i, 0)),   # x rows (resident over k)
            pl.BlockSpec((C, tk), lambda i, k: (0, k)),   # c_fc weight chunk
            pl.BlockSpec((1, tk), lambda i, k: (0, k)),   # c_fc bias chunk
            pl.BlockSpec((tk, C), lambda i, k: (k, 0)),   # c_proj weight chunk
            pl.BlockSpec((1, C), lambda i, k: (0, 0)),    # c_proj bias
        ]
        out_specs = pl.BlockSpec((tm, C), lambda i, k: (i, 0))
        scratch_shapes = [pltpu.VMEM((tm, C), jnp.float32)]
        dims = ("parallel", "arbitrary")

    out = pl.pallas_call(
        kernel,
        out_shape=jax.ShapeDtypeStruct((Mp, C), x.dtype),
        grid_spec=pltpu.PrefetchScalarGridSpec(
            num_scalar_prefetch=0,
            grid=grid,
            in_specs=in_specs,
            out_specs=out_specs,
            scratch_shapes=scratch_shapes,
        ),
        compiler_params=pltpu.CompilerParams(
            dimension_semantics=dims,
            vmem_limit_bytes=vmem_limit,
        ),
    )(x2, w_fc_b, b_fc2, w_proj_b, b_proj2)

    return out[:M].reshape(B, T, C)


def mlp_reference(x, w_fc, b_fc, w_proj, b_proj):
    h = jnp.einsum("btc,ch->bth", x, w_fc) + b_fc
    g = _gelu_tanh(h)
    return jnp.einsum("bth,hc->btc", g, w_proj) + b_proj


if __name__ == "__main__":
    # Small GPT-2-ish config with a lane-dense embed dim: n_embd = 128, hidden = 512.
    B, T, C = 2, 8, 128
    H = 4 * C

    key = jax.random.PRNGKey(0)
    kx, k1, k2, k3, k4 = jax.random.split(key, 5)

    x = jax.random.normal(kx, (B, T, C), dtype=jnp.float32)

    # Deterministic param init (PyTorch Linear default: U(-1/sqrt(fan_in), +1/sqrt(fan_in))).
    bound_fc = 1.0 / (C ** 0.5)
    bound_proj = 1.0 / (H ** 0.5)
    w_fc = jax.random.uniform(k1, (C, H), jnp.float32, -bound_fc, bound_fc)        # [in, out]
    b_fc = jax.random.uniform(k2, (H,), jnp.float32, -bound_fc, bound_fc)
    w_proj = jax.random.uniform(k3, (H, C), jnp.float32, -bound_proj, bound_proj)  # [in, out]
    b_proj = jax.random.uniform(k4, (C,), jnp.float32, -bound_proj, bound_proj)

    # Cast weights to bf16 once, OUTSIDE the jitted wrapper (avoids a per-call
    # f32 read + bf16 write of both weight matrices before the kernel runs).
    w_fc_b = jax.block_until_ready(w_fc.astype(jnp.bfloat16))
    w_proj_b = jax.block_until_ready(w_proj.astype(jnp.bfloat16))

    out = mlp_forward(x, w_fc_b, b_fc, w_proj_b, b_proj)
    out = jax.block_until_ready(out)

    ref = mlp_reference(x, w_fc, b_fc, w_proj, b_proj)
    assert out.shape == (B, T, C)
    # bf16 operands / bf16 GELU with f32 matmul accumulation -> loosened
    # tolerance vs. the pure-f32 reference.
    assert jnp.allclose(out, ref, atol=3e-2, rtol=2e-2), "mismatch vs. reference"

    # TODO(synk): attention / layernorm / embedding / lm_head of the full GPT
    # forward are not fused here; this kernel covers the MLP block only.
    print("KERNEL_OK")
</pallas_src>

<mosaic_0001>
module attributes {stable_mosaic.version = 11 : i64} {
  func.func @mlp_kernel_resident(%arg0: i32, %arg1: memref<16x128xbf16, #tpu.memory_space<vmem>>, %arg2: memref<128x512xbf16, #tpu.memory_space<vmem>>, %arg3: memref<1x512xf32, #tpu.memory_space<vmem>>, %arg4: memref<512x128xbf16, #tpu.memory_space<vmem>>, %arg5: memref<1x128xf32, #tpu.memory_space<vmem>>, %arg6: memref<16x128xf32, #tpu.memory_space<vmem>>) attributes {dimension_semantics = [#tpu.dimension_semantics<parallel>], iteration_bounds = array<i64: 1>, scalar_prefetch = 0 : i64, scratch_operands = 0 : i64, tpu.core_type = #tpu.core_type<tc>, window_params = [{transform_indices = @transform_0, window_bounds = array<i64: 16, 128>}, {pipeline_mode = #tpu.pipeline_mode<synchronous>, transform_indices = @transform_1, window_bounds = array<i64: 128, 512>}, {pipeline_mode = #tpu.pipeline_mode<synchronous>, transform_indices = @transform_2, window_bounds = array<i64: 1, 512>}, {pipeline_mode = #tpu.pipeline_mode<synchronous>, transform_indices = @transform_3, window_bounds = array<i64: 512, 128>}, {pipeline_mode = #tpu.pipeline_mode<synchronous>, transform_indices = @transform_4, window_bounds = array<i64: 1, 128>}, {transform_indices = @transform_5, window_bounds = array<i64: 16, 128>}]} {
    %c0 = arith.constant 0 : index
    %c0_0 = arith.constant 0 : index
    %0 = vector.load %arg1[%c0, %c0_0] : memref<16x128xbf16, #tpu.memory_space<vmem>>, vector<16x128xbf16>
    %c0_1 = arith.constant 0 : index
    %c0_2 = arith.constant 0 : index
    %1 = vector.load %arg2[%c0_1, %c0_2] : memref<128x512xbf16, #tpu.memory_space<vmem>>, vector<128x512xbf16>
    %cst = arith.constant dense<0.000000e+00> : vector<16x512xf32>
    %2 = tpu.matmul %0, %1, %cst {dimension_numbers = #tpu.dot_dimension_numbers<[1], [0], [0], [1], [0, 0, 1, 1], [], []>} : vector<16x128xbf16>, vector<128x512xbf16>, vector<16x512xf32> -> vector<16x512xf32>
    %c0_3 = arith.constant 0 : index
    %c0_4 = arith.constant 0 : index
    %3 = vector.load %arg3[%c0_3, %c0_4] : memref<1x512xf32, #tpu.memory_space<vmem>>, vector<1x512xf32>
    %4 = vector.broadcast %3 : vector<1x512xf32> to vector<16x512xf32>
    %5 = arith.addf %2, %4 : vector<16x512xf32>
    %6 = arith.truncf %5 : vector<16x512xf32> to vector<16x512xbf16>
    %cst_5 = arith.constant 5.000000e-01 : bf16
    %7 = vector.broadcast %cst_5 : bf16 to vector<16x512xbf16>
    %8 = arith.mulf %7, %6 : vector<16x512xbf16>
    %cst_6 = arith.constant 4.467770e-02 : bf16
    %9 = vector.broadcast %cst_6 : bf16 to vector<16x512xbf16>
    %10 = arith.mulf %9, %6 : vector<16x512xbf16>
    %11 = arith.mulf %10, %6 : vector<16x512xbf16>
    %12 = arith.mulf %11, %6 : vector<16x512xbf16>
    %13 = arith.addf %6, %12 : vector<16x512xbf16>
    %cst_7 = arith.constant 7.968750e-01 : bf16
    %14 = vector.broadcast %cst_7 : bf16 to vector<16x512xbf16>
    %15 = arith.mulf %14, %13 : vector<16x512xbf16>
    %16 = math.tanh %15 : vector<16x512xbf16>
    %cst_8 = arith.constant 1.000000e+00 : bf16
    %17 = vector.broadcast %cst_8 : bf16 to vector<16x512xbf16>
    %18 = arith.addf %17, %16 : vector<16x512xbf16>
    %19 = arith.mulf %8, %18 : vector<16x512xbf16>
    %c0_9 = arith.constant 0 : index
    %c0_10 = arith.constant 0 : index
    %20 = vector.load %arg4[%c0_9, %c0_10] : memref<512x128xbf16, #tpu.memory_space<vmem>>, vector<512x128xbf16>
    %cst_11 = arith.constant dense<0.000000e+00> : vector<16x128xf32>
    %21 = tpu.matmul %19, %20, %cst_11 {dimension_numbers = #tpu.dot_dimension_numbers<[1], [0], [0], [1], [0, 0, 1, 1], [], []>} : vector<16x512xbf16>, vector<512x128xbf16>, vector<16x128xf32> -> vector<16x128xf32>
    %c0_12 = arith.constant 0 : index
    %c0_13 = arith.constant 0 : index
    %22 = vector.load %arg5[%c0_12, %c0_13] : memref<1x128xf32, #tpu.memory_space<vmem>>, vector<1x128xf32>
    %23 = vector.broadcast %22 : vector<1x128xf32> to vector<16x128xf32>
    %24 = arith.addf %21, %23 : vector<16x128xf32>
    %c0_14 = arith.constant 0 : index
    %c0_15 = arith.constant 0 : index
    %25 = vector.load %arg6[%c0_14, %c0_15] : memref<16x128xf32, #tpu.memory_space<vmem>>, vector<16x128xf32>
    tpu.vector_store %arg6[%c0_14, %c0_15], %24 {strides = array<i32>} : memref<16x128xf32, #tpu.memory_space<vmem>>, vector<16x128xf32>,
    return
  }
  func.func @transform_0(%arg0: i32) -> (i32, i32) {
    %c0_i32 = arith.constant 0 : i32
    %c0_i32_0 = arith.constant 0 : i32
    return %arg0, %c0_i32 : i32, i32
  }
  func.func @transform_1(%arg0: i32) -> (i32, i32) {
    %c0_i32 = arith.constant 0 : i32
    %c0_i32_0 = arith.constant 0 : i32
    %c0_i32_1 = arith.constant 0 : i32
    return %c0_i32, %c0_i32_0 : i32, i32
  }
  func.func @transform_2(%arg0: i32) -> (i32, i32) {
    %c0_i32 = arith.constant 0 : i32
    %c0_i32_0 = arith.constant 0 : i32
    %c0_i32_1 = arith.constant 0 : i32
    return %c0_i32, %c0_i32_0 : i32, i32
  }
  func.func @transform_3(%arg0: i32) -> (i32, i32) {
    %c0_i32 = arith.constant 0 : i32
    %c0_i32_0 = arith.constant 0 : i32
    %c0_i32_1 = arith.constant 0 : i32
    return %c0_i32, %c0_i32_0 : i32, i32
  }
  func.func @transform_4(%arg0: i32) -> (i32, i32) {
    %c0_i32 = arith.constant 0 : i32
    %c0_i32_0 = arith.constant 0 : i32
    %c0_i32_1 = arith.constant 0 : i32
    return %c0_i32, %c0_i32_0 : i32, i32
  }
  func.func @transform_5(%arg0: i32) -> (i32, i32) {
    %c0_i32 = arith.constant 0 : i32
    %c0_i32_0 = arith.constant 0 : i32
    return %arg0, %c0_i32 : i32, i32
  }
}

</mosaic_0001>

<bundles_post_ra>
// kernel: mlp_forward.1
= control target key start
LH: loop header
LB: loop body
LE: loop exit
PB: predicated region body
PF: predicated region fallthrough
CT: control target
= control target key end

     0   :  { %10 = vsyncpa [#allocation3], 0  ;;  %s1100_s0 = inlined_call_operand.vmem [shape: bf16[16,128], index: 0, kind: input, shape index: {}]   ;;  %s1101_s1 = inlined_call_operand.hbm [shape: bf16[128,512], index: 1, kind: input, shape index: {}]   ;;  %s1102_s2 = inlined_call_operand.vmem [shape: f32[1,512], index: 2, kind: input, shape index: {}]   ;;  %s1103_s3 = inlined_call_operand.hbm [shape: bf16[512,128], index: 3, kind: input, shape index: {}]   ;;  %s1104_s4 = inlined_call_operand.vmem [shape: f32[1,128], index: 4, kind: input, shape index: {}]   ;;  %s1105_s5 = inlined_call_operand.hbm [shape: f32[16,128], index: 5, kind: output, shape index: {}]  }
   0x1   :  { %11 = vsyncpa [#allocation6], 0 }
   0x2   :  { %12 = vsyncpa [#allocation4], 0  ;;  %s1042_s18 = smov [#allocation2]  }
   0x3   :  { %s20_s19 = sshll.u32 %s1042_s18, 4  ;;  %s21_s19 = int_to_ptr.vmem [resolvable:$true] %s20_s19 }
   0x4   :  { %s984_s20 = scalar_lea.vmem %s21_s19, 4096  ;;  %p989_p1 = scmp.lt.s32.totalorder %s21_s19, %s21_s19 }
   0x5   :  { %p985_p0 = scmp.ne.s32.totalorder %s21_s19, %s984_s20  ;;  %p990_p2 = scmp.lt.s32.totalorder %s984_s20, %s984_s20 }
   0x7   :  { %p991_p3 = por %p990_p2, %p989_p1 }
   0x9   :  { %p992_p4 = pnand %p991_p3, %p985_p0 }
   0xb   :  { %995 = shalt.err (!%p992_p4)
}
   0xc   :  { %s1043_s21 = smov 256   ;;  %s1044_s22 = smov 16  }
   0xd   :  { %26 = dma.hbm_to_vmem [thread:$0]  %s1101_s1, 4096, %s21_s19, [#allocation3], %s1043_s21, %s1043_s21, %s1044_s22  }
   0xe   :  { %s1045_s25 = smov [#allocation5]  }
   0xf   :  { %s34_s26 = sshll.u32 %s1045_s25, 4  ;;  %s35_s26 = int_to_ptr.vmem [resolvable:$true] %s34_s26 }
  0x10   :  { %s1004_s27 = scalar_lea.vmem %s35_s26, 4096  ;;  %p1009_p6 = scmp.lt.s32.totalorder %s35_s26, %s35_s26 }
  0x11   :  { %p1005_p5 = scmp.ne.s32.totalorder %s35_s26, %s1004_s27  ;;  %p1010_p7 = scmp.lt.s32.totalorder %s1004_s27, %s1004_s27 }
  0x13   :  { %p1011_p8 = por %p1010_p7, %p1009_p6 }
  0x15   :  { %p1012_p9 = pnand %p1011_p8, %p1005_p5 }
  0x17   :  { %1015 = shalt.err (!%p1012_p9)
}
  0x18   :  { %s1046_s28 = smov 64   ;;  %s1047_s29 = smov 4  }
  0x19   :  { %40 = dma.hbm_to_vmem [thread:$0]  %s1103_s3, 4096, %s35_s26, [#allocation6], %s1046_s28, %s1046_s28, %s1047_s29  }
  0x1a   :  { %1036 = dma.done.wait [#allocation3], 4096  }
  0x1b   :  { %1037 = vsyncadd [#allocation3], 4294963200 }
  0x1c   :  { %1038 = dma.done.wait [#allocation6], 4096  }
  0x1d   :  { %1039 = vsyncadd [#allocation6], 4294963200  ;;  %v1048_v0 = vmov 0   ;;  %v887_v1 = vld [vmem:[#allocation2 + $0xe4] ss:$16 sps:$4 sm:$0xff]   ;;  %v936_v34 = vld [vmem:[#allocation5 + $0x78] sm:$0xff]  }
  0x1e   :  { %308 = vmatprep.mubr.bf16.mxu0 %v1048_v0  ;;  %351 = vmatprep.mubr.bf16.mxu1 %v1048_v0  ;;  %v889_v2 = vld [vmem:[#allocation2 + $0xec] ss:$16 sps:$4 sm:$0xff]   ;;  %v891_v3 = vld [vmem:[#allocation2 + $0xe0] ss:$16 sps:$4 sm:$0xff]   ;;  %v892_v4 = vld [vmem:[#allocation2 + $0xe8] ss:$16 sps:$4 sm:$0xff]  }
  0x1f   :  { %276 = vmatprep.subr.bf16.mxu0 %v887_v1  ;;  %319 = vmatprep.subr.bf16.mxu1 %v889_v2  ;;  %v893_v5 = vld [vmem:[#allocation2 + $0xc4] ss:$16 sps:$4 sm:$0xff]   ;;  %v895_v6 = vld [vmem:[#allocation2 + $0xcc] ss:$16 sps:$4 sm:$0xff]   ;;  %v897_v7 = vld [vmem:[#allocation2 + $0xc0] ss:$16 sps:$4 sm:$0xff]   ;;  %v90_v2 = vlaneseq }
  0x20   :  { %277 = vmatpush1.bf16.msra.mxu0 %v891_v3  ;;  %320 = vmatpush1.bf16.msra.mxu1 %v892_v4  ;;  %v898_v8 = vld [vmem:[#allocation2 + $0xc8] ss:$16 sps:$4 sm:$0xff]   ;;  %v899_v9 = vld [vmem:[#allocation2 + $0xa4] ss:$16 sps:$4 sm:$0xff]   ;;  %v901_v10 = vld [vmem:[#allocation2 + $0xac] ss:$16 sps:$4 sm:$0xff]  }
  0x21   :  { %278 = vmatprep.subr.bf16.mxu0 %v893_v5  ;;  %321 = vmatprep.subr.bf16.mxu1 %v895_v6  ;;  %v903_v11 = vld [vmem:[#allocation2 + $0xa0] ss:$16 sps:$4 sm:$0xff]   ;;  %v904_v12 = vld [vmem:[#allocation2 + $0xa8] ss:$16 sps:$4 sm:$0xff]   ;;  %v905_v13 = vld [vmem:[#allocation2 + $0x84] ss:$16 sps:$4 sm:$0xff]  }
  0x22   :  { %v907_v14 = vld [vmem:[#allocation2 + $0x8c] ss:$16 sps:$4 sm:$0xff]   ;;  %v909_v15 = vld [vmem:[#allocation2 + $0x80] ss:$16 sps:$4 sm:$0xff]   ;;  %v910_v16 = vld [vmem:[#allocation2 + $0x88] ss:$16 sps:$4 sm:$0xff]  }
  0x23   :  { %v911_v17 = vld [vmem:[#allocation2 + $0x64] ss:$16 sps:$4 sm:$0xff]   ;;  %v913_v18 = vld [vmem:[#allocation2 + $0x6c] ss:$16 sps:$4 sm:$0xff]   ;;  %v915_v19 = vld [vmem:[#allocation2 + $0x60] ss:$16 sps:$4 sm:$0xff]  }
  0x24   :  { %279 = vmatpush1.bf16.msra.mxu0 %v897_v7  ;;  %322 = vmatpush1.bf16.msra.mxu1 %v898_v8  ;;  %v916_v20 = vld [vmem:[#allocation2 + $0x68] ss:$16 sps:$4 sm:$0xff]   ;;  %v917_v21 = vld [vmem:[#allocation2 + $0x44] ss:$16 sps:$4 sm:$0xff]   ;;  %v919_v22 = vld [vmem:[#allocation2 + $0x4c] ss:$16 sps:$4 sm:$0xff]  }
  0x25   :  { %280 = vmatprep.subr.bf16.mxu0 %v899_v9  ;;  %323 = vmatprep.subr.bf16.mxu1 %v901_v10  ;;  %v921_v23 = vld [vmem:[#allocation2 + $0x40] ss:$16 sps:$4 sm:$0xff]   ;;  %v922_v24 = vld [vmem:[#allocation2 + $0x48] ss:$16 sps:$4 sm:$0xff]   ;;  %v923_v25 = vld [vmem:[#allocation2 + $0x24] ss:$16 sps:$4 sm:$0xff]  }
  0x26   :  { %v925_v26 = vld [vmem:[#allocation2 + $0x2c] ss:$16 sps:$4 sm:$0xff]   ;;  %v927_v27 = vld [vmem:[#allocation2 + $0x20] ss:$16 sps:$4 sm:$0xff]   ;;  %v928_v28 = vld [vmem:[#allocation2 + $0x28] ss:$16 sps:$4 sm:$0xff]  }
  0x27   :  { %v929_v29 = vld [vmem:[#allocation2 + $0x4] ss:$16 sps:$4 sm:$0xff]   ;;  %v931_v30 = vld [vmem:[#allocation2 + $0xc] ss:$16 sps:$4 sm:$0xff]   ;;  %v933_v31 = vld [vmem:[#allocation2] ss:$16 sps:$4 sm:$0xff]  }
  0x28   :  { %281 = vmatpush1.bf16.msra.mxu0 %v903_v11  ;;  %324 = vmatpush1.bf16.msra.mxu1 %v904_v12  ;;  %v934_v32 = vld [vmem:[#allocation2 + $0x8] ss:$16 sps:$4 sm:$0xff]   ;;  %v935_v33 = vld [vmem:[%s1100_s0] sm:$0xff]   ;;  %v940_v38 = vld [vmem:[#allocation5 + $0x70] sm:$0xff]   ;;  %v91_v3 = vshrl.u32 %v90_v2, 7  ;;  %s1049_s9 = smov [#allocation7]  }
  0x29   :  { %282 = vmatprep.subr.bf16.mxu0 %v905_v13  ;;  %325 = vmatprep.subr.bf16.mxu1 %v907_v14  ;;  %v937_v35 = vld [vmem:[#allocation5 + $0xf8] sm:$0xff]   ;;  %v941_v39 = vld [vmem:[#allocation5 + $0xf0] sm:$0xff]   ;;  %v944_v42 = vld [vmem:[#allocation5 + $0x68] sm:$0xff]   ;;  %s754_s10 = sshll.u32 %s1049_s9, 4  ;;  %s755_s10 = int_to_ptr.vmem [resolvable:$true] %s754_s10 }
  0x2a   :  { %v938_v36 = vld [vmem:[#allocation5 + $0x38] sm:$0xff]   ;;  %v942_v40 = vld [vmem:[#allocation5 + $0x30] sm:$0xff]   ;;  %v945_v43 = vld [vmem:[#allocation5 + $0xe8] sm:$0xff]   ;;  %v92_v4 = vsub.s32 0, %v91_v3  ;;  %v100_v5 = vsub.s32 2, %v91_v3  ;;  %v96_v7 = vsub.s32 1, %v91_v3  ;;  %p1021_p11 = scmp.lt.s32.totalorder %s755_s10, %s755_s10 }
  0x2b   :  { %v939_v37 = vld [vmem:[#allocation5 + $0xb8] sm:$0xff]   ;;  %v943_v41 = vld [vmem:[#allocation5 + $0xb0] sm:$0xff]   ;;  %v946_v44 = vld [vmem:[#allocation5 + $0x28] sm:$0xff]   ;;  %v104_v8 = vsub.s32 3, %v91_v3 }
  0x2c   :  { %283 = vmatpush1.bf16.msra.mxu0 %v909_v15  ;;  %326 = vmatpush1.bf16.msra.mxu1 %v910_v16  ;;  %v947_v45 = vld [vmem:[#allocation5 + $0xa8] sm:$0xff]   ;;  %v948_v46 = vld [vmem:[#allocation5 + $0x60] sm:$0xff]   ;;  %v952_v50 = vld [vmem:[#allocation5 + $0x58] sm:$0xff]  }
  0x2d   :  { %284 = vmatprep.subr.bf16.mxu0 %v911_v17  ;;  %327 = vmatprep.subr.bf16.mxu1 %v913_v18  ;;  %v949_v47 = vld [vmem:[#allocation5 + $0xe0] sm:$0xff]   ;;  %v953_v51 = vld [vmem:[#allocation5 + $0xd8] sm:$0xff]   ;;  %v956_v54 = vld [vmem:[#allocation5 + $0x50] sm:$0xff]  }
  0x2e   :  { %v950_v48 = vld [vmem:[#allocation5 + $0x20] sm:$0xff]   ;;  %v954_v52 = vld [vmem:[#allocation5 + $0x18] sm:$0xff]   ;;  %v957_v55 = vld [vmem:[#allocation5 + $0xd0] sm:$0xff]  }
  0x2f   :  { %v951_v49 = vld [vmem:[#allocation5 + $0xa0] sm:$0xff]   ;;  %v955_v53 = vld [vmem:[#allocation5 + $0x98] sm:$0xff]   ;;  %v958_v56 = vld [vmem:[#allocation5 + $0x10] sm:$0xff]  }
  0x30   :  { %285 = vmatpush1.bf16.msra.mxu0 %v915_v19  ;;  %328 = vmatpush1.bf16.msra.mxu1 %v916_v20  ;;  %v959_v57 = vld [vmem:[#allocation5 + $0x90] sm:$0xff]   ;;  %v960_v58 = vld [vmem:[#allocation5 + $0x48] sm:$0xff]   ;;  %v964_v62 = vld [vmem:[#allocation5 + $0x40] sm:$0xff]  }
  0x31   :  { %286 = vmatprep.subr.bf16.mxu0 %v917_v21  ;;  %329 = vmatprep.subr.bf16.mxu1 %v919_v22  ;;  %v961_v59 = vld [vmem:[#allocation5 + $0xc8] sm:$0xff]   ;;  %v965_v63 = vld [vmem:[#allocation5 + $0xc0] sm:$0xff]  }
  0x32   :  { %v962_v60 = vld [vmem:[#allocation5 + $0x8] sm:$0xff]   ;;  %v966_v0 = vld [vmem:[#allocation5] sm:$0xff]  }
  0x33   :  { %v963_v61 = vld [vmem:[#allocation5 + $0x88] sm:$0xff]   ;;  %v967_v1 = vld [vmem:[#allocation5 + $0x80] sm:$0xff]  }
  0x34   :  { %287 = vmatpush1.bf16.msra.mxu0 %v921_v23  ;;  %330 = vmatpush1.bf16.msra.mxu1 %v922_v24  ;;  %v88_v6 = vld [vmem:[%s1102_s2] sm:$0xf] }
  0x35   :  { %288 = vmatprep.subr.bf16.mxu0 %v923_v25  ;;  %331 = vmatprep.subr.bf16.mxu1 %v925_v26  ;;  %v93_v11 = vrot.slane %v88_v6, %v92_v4  ;;  %v101_v12 = vrot.slane %v88_v6, %v100_v5  ;;  %v97_v13 = vrot.slane %v88_v6, %v96_v7  ;;  %v800_v7 = vld [vmem:[%s1104_s4] ss:$0 sm:$0xff]  ;;  %s1016_s4 = scalar_lea.vmem %s755_s10, 256 }
  0x36   :  { %v105_v15 = vrot.slane %v88_v6, %v104_v8  ;;  %p1017_p10 = scmp.ne.s32.totalorder %s755_s10, %s1016_s4  ;;  %p1022_p12 = scmp.lt.s32.totalorder %s1016_s4, %s1016_s4 }
  0x38   :  { %289 = vmatpush1.bf16.msra.mxu0 %v927_v27  ;;  %332 = vmatpush1.bf16.msra.mxu1 %v928_v28  ;;  %p1023_p13 = por %p1022_p12, %p1021_p11 }
  0x39   :  { %290 = vmatprep.subr.bf16.mxu0 %v929_v29  ;;  %333 = vmatprep.subr.bf16.mxu1 %v931_v30 }
  0x3a   :  { %p1024_p0 = pnand %p1023_p13, %p1017_p10 }
  0x3c   :  { %291 = vmatpush1.bf16.msra.mxu0 %v933_v31  ;;  %334 = vmatpush1.bf16.msra.mxu1 %v934_v32 }
  0x3d   :  { %833 = vmatprep.subr.bf16.mxu0 %v936_v34  ;;  %855 = vmatprep.subr.bf16.mxu1 %v937_v35 }
  0x3f   :  { %309 = vmatmul.mubr.bf16.vlgmr.msra.gmra.mxu0 %v935_v33  ;;  %352 = vmatmul.mubr.bf16.vlgmr.msra.gmra.mxu1 %v935_v33 }
  0x40   :  { %834 = vmatpush3.bf16.msra.mxu0 %v938_v36  ;;  %856 = vmatpush3.bf16.msra.mxu1 %v939_v37 }
  0x41   :  { %835 = vmatprep.subr.bf16.mxu0 %v940_v38  ;;  %857 = vmatprep.subr.bf16.mxu1 %v941_v39 }
  0x44   :  { %836 = vmatpush3.bf16.msra.mxu0 %v942_v40  ;;  %858 = vmatpush3.bf16.msra.mxu1 %v943_v41 }
  0x45   :  { %837 = vmatprep.subr.bf16.mxu0 %v944_v42  ;;  %859 = vmatprep.subr.bf16.mxu1 %v945_v43 }
  0x48   :  { %838 = vmatpush3.bf16.msra.mxu0 %v946_v44  ;;  %860 = vmatpush3.bf16.msra.mxu1 %v947_v45 }
  0x49   :  { %839 = vmatprep.subr.bf16.mxu0 %v948_v46  ;;  %861 = vmatprep.subr.bf16.mxu1 %v949_v47 }
  0x4c   :  { %840 = vmatpush3.bf16.msra.mxu0 %v950_v48  ;;  %862 = vmatpush3.bf16.msra.mxu1 %v951_v49 }
  0x4d   :  { %841 = vmatprep.subr.bf16.mxu0 %v952_v50  ;;  %863 = vmatprep.subr.bf16.mxu1 %v953_v51 }
  0x50   :  { %842 = vmatpush3.bf16.msra.mxu0 %v954_v52  ;;  %864 = vmatpush3.bf16.msra.mxu1 %v955_v53 }
  0x51   :  { %843 = vmatprep.subr.bf16.mxu0 %v956_v54  ;;  %865 = vmatprep.subr.bf16.mxu1 %v957_v55 }
  0x54   :  { %844 = vmatpush3.bf16.msra.mxu0 %v958_v56  ;;  %866 = vmatpush3.bf16.msra.mxu1 %v959_v57 }
  0x55   :  { %845 = vmatprep.subr.bf16.mxu0 %v960_v58  ;;  %867 = vmatprep.subr.bf16.mxu1 %v961_v59 }
  0x58   :  { %846 = vmatpush3.bf16.msra.mxu0 %v962_v60  ;;  %868 = vmatpush3.bf16.msra.mxu1 %v963_v61 }
  0x59   :  { %847 = vmatprep.subr.bf16.mxu0 %v964_v62  ;;  %869 = vmatprep.subr.bf16.mxu1 %v965_v63 }
  0x5c   :  { %848 = vmatpush3.bf16.msra.mxu0 %v966_v0  ;;  %870 = vmatpush3.bf16.msra.mxu1 %v967_v1 }
  0xff   :  { %v310_v9 = vpop.f32.mrf.mxu0  ;;  %v353_v10 = vpop.f32.mrf.mxu1 }
 0x100   :  { %v311_v19 = vadd.f32 %v310_v9, %v93_v11  ;;  %v354_v20 = vadd.f32 %v353_v10, %v101_v12 }
 0x101   :  { %v312_v14 = vpop.f32.mrf.mxu0  ;;  %v355_v16 = vpop.f32.mrf.mxu1 }
 0x102   :  { %v313_v23 = vadd.f32 %v312_v14, %v97_v13  ;;  %v356_v24 = vadd.f32 %v355_v16, %v105_v15 }
 0x103   :  { %v314_v17 = vpop.f32.mrf.mxu0  ;;  %v357_v18 = vpop.f32.mrf.mxu1 }
 0x104   :  { %v315_v21 = vadd.f32 %v314_v17, %v93_v11  ;;  %v358_v22 = vadd.f32 %v357_v18, %v101_v12 }
 0x105   :  { %v316_v25 = vpop.f32.mrf.mxu0  ;;  %v359_v26 = vpop.f32.mrf.mxu1 }
 0x106   :  { %v362_v27 = vpack.c.bf16 %v315_v21, %v311_v19  ;;  %v364_v28 = vpack.c.bf16 %v358_v22, %v354_v20  ;;  %v317_v29 = vadd.f32 %v316_v25, %v97_v13  ;;  %v360_v30 = vadd.f32 %v359_v26, %v105_v15 }
 0x108   :  { %v370_v31 = vmul.bf16 1027030327, %v362_v27  ;;  %v372_v32 = vmul.bf16 1027030327, %v364_v28  ;;  %v363_v33 = vpack.c.bf16 %v317_v29, %v313_v23  ;;  %v365_v34 = vpack.c.bf16 %v360_v30, %v356_v24 }
 0x109   :  { %v366_v63 = vmul.bf16 1056980736, %v362_v27  ;;  %v368_v1 = vmul.bf16 1056980736, %v364_v28 }
 0x10a   :  { %v374_v35 = vmul.bf16 %v370_v31, %v362_v27  ;;  %v376_v36 = vmul.bf16 %v372_v32, %v364_v28  ;;  %v371_v37 = vmul.bf16 1027030327, %v363_v33  ;;  %v373_v38 = vmul.bf16 1027030327, %v365_v34 }
 0x10b   :  { %v367_v58 = vmul.bf16 1056980736, %v363_v33  ;;  %v369_v61 = vmul.bf16 1056980736, %v365_v34 }
 0x10c   :  { %v378_v39 = vmul.bf16 %v374_v35, %v362_v27  ;;  %v380_v40 = vmul.bf16 %v376_v36, %v364_v28  ;;  %v375_v41 = vmul.bf16 %v371_v37, %v363_v33  ;;  %v377_v42 = vmul.bf16 %v373_v38, %v365_v34 }
 0x10e   :  { %v379_v43 = vmul.bf16 %v375_v41, %v363_v33  ;;  %v381_v44 = vmul.bf16 %v377_v42, %v365_v34  ;;  %v382_v45 = vadd.bf16 %v378_v39, %v362_v27  ;;  %v384_v46 = vadd.bf16 %v380_v40, %v364_v28 }
 0x110   :  { %v383_v47 = vadd.bf16 %v379_v43, %v363_v33  ;;  %v385_v48 = vadd.bf16 %v381_v44, %v365_v34  ;;  %v386_v49 = vmul.bf16 1061961548, %v382_v45  ;;  %v388_v50 = vmul.bf16 1061961548, %v384_v46 }
 0x112   :  { %v387_v51 = vmul.bf16 1061961548, %v383_v47  ;;  %v389_v52 = vmul.bf16 1061961548, %v385_v48  ;;  %968 = vtanh.bf16 %v386_v49 }
 0x113   :  { %970 = vtanh.bf16 %v388_v50 }
 0x114   :  { %972 = vtanh.bf16 %v387_v51 }
 0x115   :  { %974 = vtanh.bf16 %v389_v52 }
 0x120   :  { %v969_v53 = vpop.eup %968 }
 0x121   :  { %v971_v54 = vpop.eup %970  ;;  %v394_v56 = vadd.bf16 1065369472, %v969_v53 }
 0x122   :  { %v973_v55 = vpop.eup %972  ;;  %v396_v60 = vadd.bf16 1065369472, %v971_v54 }
 0x123   :  { %v975_v57 = vpop.eup %974  ;;  %v395_v59 = vadd.bf16 1065369472, %v973_v55  ;;  %v398_v3 = vmul.bf16 %v394_v56, %v366_v63 }
 0x124   :  { %v397_v62 = vadd.bf16 1065369472, %v975_v57  ;;  %v400_v4 = vmul.bf16 %v396_v60, %v368_v1 }
 0x125   :  { %v399_v0 = vmul.bf16 %v395_v59, %v367_v58 }
 0x126   :  { %v401_v2 = vmul.bf16 %v397_v62, %v369_v61 }
 0x127   :  { %697 = vmatprep.mubr.bf16.mxu0 %v399_v0 }
 0x128   :  { %738 = vmatprep.mubr.bf16.mxu1 %v401_v2  ;;  %698 = vmatmul.mubr.bf16.vlgmr.msra.gmra.mxu0 %v398_v3 }
 0x129   :  { %739 = vmatmul.mubr.bf16.vlgmr.msra.gmra.mxu1 %v400_v4 }
 0x1e8   :  { %v849_v5 = vpop.f32.mrf.mxu0 }
 0x1e9   :  { %v871_v6 = vpop.f32.mrf.mxu1 }
 0x1ea   :  { %v850_v8 = vpop.f32.mrf.mxu0 }
 0x1eb   :  { %v851_v9 = vadd.f32 %v850_v8, %v849_v5  ;;  %v872_v10 = vpop.f32.mrf.mxu1 }
 0x1ec   :  { %v852_v11 = vpop.f32.mrf.mxu0  ;;  %v873_v13 = vadd.f32 %v872_v10, %v871_v6 }
 0x1ed   :  { %v700_v12 = vadd.f32 %v851_v9, %v800_v7  ;;  %v874_v14 = vpop.f32.mrf.mxu1 }
 0x1ee   :  { %v853_v15 = vpop.f32.mrf.mxu0 }
 0x1ef   :  { %v741_v16 = vadd.f32 %v873_v13, %v700_v12  ;;  %v854_v17 = vadd.f32 %v853_v15, %v852_v11  ;;  %v875_v18 = vpop.f32.mrf.mxu1 }
 0x1f0   :  { %v876_v20 = vadd.f32 %v875_v18, %v874_v14 }
 0x1f1   :  { %747 = vst [vmem:[#allocation7] sm:$0xff] %v741_v16  ;;  %v703_v19 = vadd.f32 %v854_v17, %v800_v7 }
 0x1f3   :  { %v744_v21 = vadd.f32 %v876_v20, %v703_v19 }
 0x1f5   :  { %748 = vst [vmem:[#allocation7 + $0x8] sm:$0xff] %v744_v21 }
 0x1f6   :  { %1027 = shalt.err (!%p1024_p0)
}
 0x1f7   :  { %s1050_s11 = smov 128   ;;  %s1051_s12 = smov 8  }
 0x1f8   :  { %760 = dma.vmem_to_hbm [thread:$0]  %s755_s10, 256, %s1105_s5, [#allocation4], %s1050_s11, %s1050_s11, %s1051_s12  }
 0x1f9   :  { %1040 = dma.done.wait [#allocation4], 256  }
 0x1fa   :  { %1041 = vsyncadd [#allocation4], 4294967040 }
 0x1fb   :  { %764 = vsyncpa [#allocation3], 1 }
 0x1fc   :  { %765 = vsyncpa [#allocation6], 1 }
 0x1fd   :  { %766 = vsyncpa [#allocation4], 1 }

</bundles_post_ra>
